<compile_context>
chip_gen: v7x
topology: tpu7x:2x2x1
jax: 0.10.0
libtpu: 0.0.40
codegen_flags: <defaults>
</compile_context>

<pallas_src>
import jax
import jax.numpy as jnp
from jax import lax
from jax.experimental import pallas as pl
from jax.experimental.pallas import tpu as pltpu


def mlp_kernel(x_ref, w1_ref, b1_ref, w2_ref, b2_ref, w3_ref, b3_ref, o_ref):
    """Fused MLP: (Linear + ReLU) x 2 -> Linear(out=1), eval-mode dropout.

    x_ref is a native-layout [tile_m, D] f32 tile; weights are PyTorch layout
    [out, in] (bf16), biases [out, 1] f32. All intermediate results are kept in
    [features, tile_m] orientation so every store (including the final
    out_features==1 row) is lane-dense.
    # TODO(synk): training-mode dropout (pltpu.prng_random_bits mask) not implemented.
    """
    cdt = w1_ref.dtype  # MXU operand dtype (bf16)

    # w1[H1, D] (.) x[tile_m, D] contracted over D  ->  [H1, tile_m]
    h = lax.dot_general(
        w1_ref[...], x_ref[...].astype(cdt),
        dimension_numbers=(((1,), (1,)), ((), ())),
        preferred_element_type=jnp.float32)
    h = jnp.maximum(h + b1_ref[...], 0.0)

    # w2[H2, H1] @ h[H1, tile_m] -> [H2, tile_m]
    h = jnp.dot(w2_ref[...], h.astype(cdt), preferred_element_type=jnp.float32)
    h = jnp.maximum(h + b2_ref[...], 0.0)

    # w3[O, H2] @ h[H2, tile_m] -> [O, tile_m]   (O == 1, lane-dense store)
    out = jnp.dot(w3_ref[...], h.astype(cdt), preferred_element_type=jnp.float32)
    o_ref[...] = (out + b3_ref[...]).astype(o_ref.dtype)


def ann_forward(x, params, *, tile_m=None, compute_dtype=jnp.bfloat16):
    """Forward pass of ANNModel (eval mode).

    x:      [batch, input_dim] float32 (streamed to the kernel as-is)
    params: ((W1, b1), (W2, b2), (W3, b3)); W_i in PyTorch layout [out, in],
            b_i shaped [out].
    Returns [batch, 1] float32, matching the PyTorch module.
    """
    (w1, b1), (w2, b2), (w3, b3) = params
    B, D = x.shape
    H1, H2, O = w1.shape[0], w2.shape[0], w3.shape[0]

    # --- batch (lane-dim) tiling ------------------------------------------------
    # MAX_TILE = 8192 lanes: x tile (f32, double-buffered) + f32 intermediates
    # stay well under v7x's 64 MiB VMEM while amortizing per-step overhead.
    MAX_TILE = 8192
    if tile_m is None:
        if B <= 128:
            tile_m = 128                        # one full 128-lane block
        elif B <= 2 * MAX_TILE:
            # >=2 lane-aligned tiles so both v7x TensorCores get work.
            tile_m = 128 * pl.cdiv(B, 2 * 128)
        else:
            tile_m = MAX_TILE
    else:
        tile_m = max(128, 128 * pl.cdiv(tile_m, 128))  # force lane alignment

    b_pad = tile_m * pl.cdiv(B, tile_m)
    num_tiles = b_pad // tile_m

    # Pad the batch dim only (zeros); no transpose, no dtype-cast prepass.
    x_p = x if b_pad == B else jnp.pad(x, ((0, b_pad - B), (0, 0)))

    w1c, w2c, w3c = (w.astype(compute_dtype) for w in (w1, w2, w3))
    b1c = b1.reshape(H1, 1).astype(jnp.float32)
    b2c = b2.reshape(H2, 1).astype(jnp.float32)
    b3c = b3.reshape(O, 1).astype(jnp.float32)

    w_itemsize = jnp.dtype(compute_dtype).itemsize
    cost = pl.CostEstimate(
        flops=2 * b_pad * (D * H1 + H1 * H2 + H2 * O),
        transcendentals=0,
        bytes_accessed=(x_p.size * 4                                   # f32 x stream
                        + (w1c.size + w2c.size + w3c.size) * w_itemsize
                        + (b1c.size + b2c.size + b3c.size) * 4
                        + b_pad * O * 4),
    )

    # Explicit VMEM budget (re-derived for the larger tiles; safe on v7x 64 MiB).
    est_vmem = (3 * tile_m * D * 4                       # x tile buffers (headroom)
                + 2 * tile_m * O * 4                     # out tile buffers
                + 2 * w_itemsize * (H1 * D + H2 * H1 + O * H2)
                + 2 * 4 * (H1 + H2 + O)
                + (H1 + H2) * tile_m * 4)                # f32 intermediates
    vmem_limit = int(min(max(4 * est_vmem, 32 << 20), 48 << 20))

    full = lambda i: (0, 0)  # weights / biases: one resident block each
    out_t = pl.pallas_call(
        mlp_kernel,
        out_shape=jax.ShapeDtypeStruct((O, b_pad), jnp.float32),
        grid=(num_tiles,),
        in_specs=[
            pl.BlockSpec((tile_m, D), lambda i: (i, 0)),   # x: native layout tile
            pl.BlockSpec((H1, D), full),                   # W1
            pl.BlockSpec((H1, 1), full),                   # b1
            pl.BlockSpec((H2, H1), full),                  # W2
            pl.BlockSpec((H2, 1), full),                   # b2
            pl.BlockSpec((O, H2), full),                   # W3
            pl.BlockSpec((O, 1), full),                    # b3
        ],
        out_specs=pl.BlockSpec((O, tile_m), lambda i: (0, i)),  # lane-dense out
        compiler_params=pltpu.CompilerParams(
            dimension_semantics=("parallel",),
            vmem_limit_bytes=vmem_limit),
        cost_estimate=cost,
    )(x_p, w1c, b1c, w2c, b2c, w3c, b3c)

    # Back to the PyTorch output layout [batch, 1] (drop batch padding).
    return out_t[:, :B].T


def init_params(key, input_dim, hidden_layers):
    """nn.Linear-style init. Weights in PyTorch layout [out, in], biases [out]."""
    dims = [input_dim] + list(hidden_layers) + [1]
    params = []
    for i in range(len(dims) - 1):
        key, kw, kb = jax.random.split(key, 3)
        fan_in, fan_out = dims[i], dims[i + 1]
        bound = 1.0 / jnp.sqrt(fan_in)
        w = jax.random.uniform(kw, (fan_out, fan_in), jnp.float32, -bound, bound)
        b = jax.random.uniform(kb, (fan_out,), jnp.float32, -bound, bound)
        params.append((w, b))
    return tuple(params)


def reference_forward(x, params, compute_dtype=jnp.bfloat16):
    """Pure-JAX reference mirroring the kernel numerics (MXU operands rounded to
    compute_dtype, f32 accumulation), eval-mode dropout (identity)."""
    rnd = lambda a: a.astype(compute_dtype).astype(jnp.float32)
    (w1, b1), (w2, b2), (w3, b3) = params
    h = jnp.maximum(rnd(x) @ rnd(w1).T + b1, 0.0)
    h = jnp.maximum(rnd(h) @ rnd(w2).T + b2, 0.0)
    return rnd(h) @ rnd(w3).T + b3


if __name__ == "__main__":
    key = jax.random.PRNGKey(0)
    input_dim = 32
    hidden_layers = [64, 32]
    dropout_rate = 0.1  # eval-mode -> identity

    k_x, k_x2, k_x3, k_p = jax.random.split(key, 4)
    params = init_params(k_p, input_dim, hidden_layers)

    # 1) Tiny batch -> padded to one full 128-lane block, single grid step.
    batch = 16
    x = jax.random.normal(k_x, (batch, input_dim), jnp.float32)
    out = jax.block_until_ready(ann_forward(x, params))
    ref = reference_forward(x, params)
    assert out.shape == (batch, 1), out.shape
    assert jnp.allclose(out, ref, atol=5e-3, rtol=5e-3), (
        f"max err {jnp.max(jnp.abs(out - ref))}")

    # 2) Batch not divisible by 128 -> padded, auto-split into >=2 lane-aligned
    #    tiles (parallel grid axis -> both v7x TensorCores).
    batch2 = 272
    x2 = jax.random.normal(k_x2, (batch2, input_dim), jnp.float32)
    out2 = jax.block_until_ready(ann_forward(x2, params))
    ref2 = reference_forward(x2, params)
    assert out2.shape == (batch2, 1), out2.shape
    assert jnp.allclose(out2, ref2, atol=5e-3, rtol=5e-3), (
        f"max err {jnp.max(jnp.abs(out2 - ref2))}")

    # 3) Explicit small tile override -> 3-step pipelined grid (exercises the
    #    multi-tile streaming path).
    batch3 = 2048
    x3 = jax.random.normal(k_x3, (batch3, input_dim), jnp.float32)
    out3 = jax.block_until_ready(ann_forward(x3, params, tile_m=512))
    ref3 = reference_forward(x3, params)
    assert out3.shape == (batch3, 1), out3.shape
    assert jnp.allclose(out3, ref3, atol=5e-3, rtol=5e-3), (
        f"max err {jnp.max(jnp.abs(out3 - ref3))}")

    print("KERNEL_OK")
</pallas_src>

<mosaic_0001>
module attributes {stable_mosaic.version = 11 : i64} {
  func.func @mlp_kernel(%arg0: i32, %arg1: memref<128x32xf32, #tpu.memory_space<vmem>>, %arg2: memref<64x32xbf16, #tpu.memory_space<vmem>>, %arg3: memref<64x1xf32, #tpu.memory_space<vmem>>, %arg4: memref<32x64xbf16, #tpu.memory_space<vmem>>, %arg5: memref<32x1xf32, #tpu.memory_space<vmem>>, %arg6: memref<1x32xbf16, #tpu.memory_space<vmem>>, %arg7: memref<1x1xf32, #tpu.memory_space<vmem>>, %arg8: memref<1x128xf32, #tpu.memory_space<vmem>>) attributes {dimension_semantics = [#tpu.dimension_semantics<parallel>], iteration_bounds = array<i64: 1>, scalar_prefetch = 0 : i64, scratch_operands = 0 : i64, tpu.core_type = #tpu.core_type<tc>, window_params = [{transform_indices = @transform_0, window_bounds = array<i64: 128, 32>}, {pipeline_mode = #tpu.pipeline_mode<synchronous>, transform_indices = @transform_1, window_bounds = array<i64: 64, 32>}, {pipeline_mode = #tpu.pipeline_mode<synchronous>, transform_indices = @transform_2, window_bounds = array<i64: 64, 1>}, {pipeline_mode = #tpu.pipeline_mode<synchronous>, transform_indices = @transform_3, window_bounds = array<i64: 32, 64>}, {pipeline_mode = #tpu.pipeline_mode<synchronous>, transform_indices = @transform_4, window_bounds = array<i64: 32, 1>}, {pipeline_mode = #tpu.pipeline_mode<synchronous>, transform_indices = @transform_5, window_bounds = array<i64: 1, 32>}, {pipeline_mode = #tpu.pipeline_mode<synchronous>, transform_indices = @transform_6, window_bounds = array<i64: 1, 1>}, {transform_indices = @transform_7, window_bounds = array<i64: 1, 128>}]} {
    %c0 = arith.constant 0 : index
    %c0_0 = arith.constant 0 : index
    %0 = vector.load %arg2[%c0, %c0_0] : memref<64x32xbf16, #tpu.memory_space<vmem>>, vector<64x32xbf16>
    %c0_1 = arith.constant 0 : index
    %c0_2 = arith.constant 0 : index
    %1 = vector.load %arg1[%c0_1, %c0_2] : memref<128x32xf32, #tpu.memory_space<vmem>>, vector<128x32xf32>
    %2 = arith.truncf %1 : vector<128x32xf32> to vector<128x32xbf16>
    %cst = arith.constant dense<0.000000e+00> : vector<64x128xf32>
    %3 = tpu.matmul %0, %2, %cst {dimension_numbers = #tpu.dot_dimension_numbers<[1], [1], [0], [0], [0, 0, 1, 0], [], []>} : vector<64x32xbf16>, vector<128x32xbf16>, vector<64x128xf32> -> vector<64x128xf32>
    %c0_3 = arith.constant 0 : index
    %c0_4 = arith.constant 0 : index
    %4 = vector.load %arg3[%c0_3, %c0_4] : memref<64x1xf32, #tpu.memory_space<vmem>>, vector<64x1xf32>
    %5 = vector.broadcast %4 : vector<64x1xf32> to vector<64x128xf32>
    %6 = arith.addf %3, %5 : vector<64x128xf32>
    %cst_5 = arith.constant 0.000000e+00 : f32
    %7 = vector.broadcast %cst_5 : f32 to vector<64x128xf32>
    %8 = arith.maximumf %6, %7 : vector<64x128xf32>
    %c0_6 = arith.constant 0 : index
    %c0_7 = arith.constant 0 : index
    %9 = vector.load %arg4[%c0_6, %c0_7] : memref<32x64xbf16, #tpu.memory_space<vmem>>, vector<32x64xbf16>
    %10 = arith.truncf %8 : vector<64x128xf32> to vector<64x128xbf16>
    %cst_8 = arith.constant dense<0.000000e+00> : vector<32x128xf32>
    %11 = tpu.matmul %9, %10, %cst_8 {dimension_numbers = #tpu.dot_dimension_numbers<[1], [0], [0], [1], [0, 0, 1, 1], [], []>} : vector<32x64xbf16>, vector<64x128xbf16>, vector<32x128xf32> -> vector<32x128xf32>
    %c0_9 = arith.constant 0 : index
    %c0_10 = arith.constant 0 : index
    %12 = vector.load %arg5[%c0_9, %c0_10] : memref<32x1xf32, #tpu.memory_space<vmem>>, vector<32x1xf32>
    %13 = vector.broadcast %12 : vector<32x1xf32> to vector<32x128xf32>
    %14 = arith.addf %11, %13 : vector<32x128xf32>
    %cst_11 = arith.constant 0.000000e+00 : f32
    %15 = vector.broadcast %cst_11 : f32 to vector<32x128xf32>
    %16 = arith.maximumf %14, %15 : vector<32x128xf32>
    %c0_12 = arith.constant 0 : index
    %c0_13 = arith.constant 0 : index
    %17 = vector.load %arg6[%c0_12, %c0_13] : memref<1x32xbf16, #tpu.memory_space<vmem>>, vector<1x32xbf16>
    %18 = arith.truncf %16 : vector<32x128xf32> to vector<32x128xbf16>
    %cst_14 = arith.constant dense<0.000000e+00> : vector<1x128xf32>
    %19 = tpu.matmul %17, %18, %cst_14 {dimension_numbers = #tpu.dot_dimension_numbers<[1], [0], [0], [1], [0, 0, 1, 1], [], []>} : vector<1x32xbf16>, vector<32x128xbf16>, vector<1x128xf32> -> vector<1x128xf32>
    %c0_15 = arith.constant 0 : index
    %c0_16 = arith.constant 0 : index
    %20 = vector.load %arg7[%c0_15, %c0_16] : memref<1x1xf32, #tpu.memory_space<vmem>>, vector<1x1xf32>
    %21 = vector.broadcast %20 : vector<1x1xf32> to vector<1x128xf32>
    %22 = arith.addf %19, %21 : vector<1x128xf32>
    %c0_17 = arith.constant 0 : index
    %c0_18 = arith.constant 0 : index
    %23 = vector.load %arg8[%c0_17, %c0_18] : memref<1x128xf32, #tpu.memory_space<vmem>>, vector<1x128xf32>
    tpu.vector_store %arg8[%c0_17, %c0_18], %22 {strides = array<i32>} : memref<1x128xf32, #tpu.memory_space<vmem>>, vector<1x128xf32>,
    return
  }
  func.func @transform_0(%arg0: i32) -> (i32, i32) {
    %c0_i32 = arith.constant 0 : i32
    %c0_i32_0 = arith.constant 0 : i32
    return %arg0, %c0_i32 : i32, i32
  }
  func.func @transform_1(%arg0: i32) -> (i32, i32) {
    %c0_i32 = arith.constant 0 : i32
    %c0_i32_0 = arith.constant 0 : i32
    %c0_i32_1 = arith.constant 0 : i32
    return %c0_i32, %c0_i32_0 : i32, i32
  }
  func.func @transform_2(%arg0: i32) -> (i32, i32) {
    %c0_i32 = arith.constant 0 : i32
    %c0_i32_0 = arith.constant 0 : i32
    %c0_i32_1 = arith.constant 0 : i32
    return %c0_i32, %c0_i32_0 : i32, i32
  }
  func.func @transform_3(%arg0: i32) -> (i32, i32) {
    %c0_i32 = arith.constant 0 : i32
    %c0_i32_0 = arith.constant 0 : i32
    %c0_i32_1 = arith.constant 0 : i32
    return %c0_i32, %c0_i32_0 : i32, i32
  }
  func.func @transform_4(%arg0: i32) -> (i32, i32) {
    %c0_i32 = arith.constant 0 : i32
    %c0_i32_0 = arith.constant 0 : i32
    %c0_i32_1 = arith.constant 0 : i32
    return %c0_i32, %c0_i32_0 : i32, i32
  }
  func.func @transform_5(%arg0: i32) -> (i32, i32) {
    %c0_i32 = arith.constant 0 : i32
    %c0_i32_0 = arith.constant 0 : i32
    %c0_i32_1 = arith.constant 0 : i32
    return %c0_i32, %c0_i32_0 : i32, i32
  }
  func.func @transform_6(%arg0: i32) -> (i32, i32) {
    %c0_i32 = arith.constant 0 : i32
    %c0_i32_0 = arith.constant 0 : i32
    %c0_i32_1 = arith.constant 0 : i32
    return %c0_i32, %c0_i32_0 : i32, i32
  }
  func.func @transform_7(%arg0: i32) -> (i32, i32) {
    %c0_i32 = arith.constant 0 : i32
    %c0_i32_0 = arith.constant 0 : i32
    return %c0_i32, %arg0 : i32, i32
  }
}

</mosaic_0001>

<bundles_post_ra>
// kernel: tpu_custom_call.1
= control target key start
LH: loop header
LB: loop body
LE: loop exit
PB: predicated region body
PF: predicated region fallthrough
CT: control target
= control target key end

     0   :  { %s722_s0 = inlined_call_operand.vmem [shape: f32[128,32], index: 0, kind: input, shape index: {}]   ;;  %s723_s1 = inlined_call_operand.vmem [shape: bf16[64,32], index: 1, kind: input, shape index: {}]   ;;  %s724_s2 = inlined_call_operand.vmem [shape: f32[64,1], index: 2, kind: input, shape index: {}]   ;;  %s725_s3 = inlined_call_operand.vmem [shape: bf16[32,64], index: 3, kind: input, shape index: {}]   ;;  %s726_s4 = inlined_call_operand.vmem [shape: f32[32,1], index: 4, kind: input, shape index: {}]   ;;  %s727_s5 = inlined_call_operand.vmem [shape: bf16[1,32], index: 5, kind: input, shape index: {}]   ;;  %s728_s6 = inlined_call_operand.<no memory space> [shape: f32[1,1], index: 6, kind: input, shape index: {}]   ;;  %s729_s7 = inlined_call_operand.hbm [shape: f32[1,128], index: 7, kind: output, shape index: {}]  }
   0x1   :  { %v12_v0 = vstv %s728_s6 }
   0x2   :  { %13 = vst [vmem:[#allocation2] sm:$0x1] %v12_v0 }
   0x3   :  { %v38_v1 = vld [vmem:[%s722_s0] sm:$0xff]  ;;  %v39_v2 = vld [vmem:[%s722_s0 + $0x8] sm:$0xff]  ;;  %vm130_vm0 = vcmask 261120   ;;  %v40_v3 = vld [vmem:[%s722_s0 + $0x10] sm:$0xff]  ;;  %v535_v6 = vmov 0  }
   0x4   :  { %v54_v4 = vpack.c.bf16 %v39_v2, %v38_v1  ;;  %v41_v5 = vld [vmem:[%s722_s0 + $0x18] sm:$0xff]  ;;  %503 = vset.pattern.permute.xlu0 %v535_v6  ;;  %504 = vset.pattern.permute.xlu1 %v535_v6  ;;  %v42_v9 = vld [vmem:[%s722_s0 + $0x20] sm:$0xff]  ;;  %v43_v10 = vld [vmem:[%s722_s0 + $0x28] sm:$0xff] }
   0x5   :  { %v55_v7 = vpack.c.bf16 %v41_v5, %v40_v3  ;;  %v505_v11 = vld [vmem:[%s723_s1] sm:$0xff]   ;;  %v56_v13 = vpack.c.bf16 %v43_v10, %v42_v9  ;;  %v64_v15 = vld [vmem:[%s724_s2 + $0x10] sm:$0xff]  ;;  %v63_v16 = vld [vmem:[%s724_s2 + $0x8] sm:$0xff] }
   0x6   :  { %491 = vmatprep.subr.msk.bf16.mxu0 %vm130_vm0, %v54_v4  ;;  %v144_v8 = vsel %vm130_vm0, %v54_v4, 0  ;;  %463 = vmatprep.mubr.msk.bf16.mxu0 %vm130_vm0, %v505_v11  ;;  %v62_v14 = vld [vmem:[%s724_s2] sm:$0xff]  ;;  %v65_v17 = vld [vmem:[%s724_s2 + $0x18] sm:$0xff]  ;;  %v44_v18 = vld [vmem:[%s722_s0 + $0x30] sm:$0xff] }
   0x7   :  { %448 = vmatpush3.bf16.xpose.msra.mxu0 %v144_v8  ;;  %v147_v12 = vsel %vm130_vm0, %v55_v7, 0  ;;  %72 = vperm.xlu0 %503, %v62_v14   ;;  %v45_v19 = vld [vmem:[%s722_s0 + $0x38] sm:$0xff]  ;;  %v66_v20 = vld [vmem:[%s724_s2 + $0x20] sm:$0xff] }
   0x8   :  { %492 = vmatprep.subr.msk.bf16.mxu0 %vm130_vm0, %v55_v7  ;;  %82 = vperm.xlu1 %504, %v64_v15  }
   0xb   :  { %77 = vperm.xlu0 %503, %v63_v16  }
   0xc   :  { %87 = vperm.xlu1 %504, %v65_v17  }
   0xf   :  { %450 = vmatpush3.bf16.xpose.msra.mxu0 %v147_v12 }
  0x10   :  { %493 = vmatprep.subr.msk.bf16.mxu0 %vm130_vm0, %v56_v13 }
  0x11   :  { %14 = vsyncpa [#allocation4], 0  ;;  %v67_v21 = vld [vmem:[%s724_s2 + $0x28] sm:$0xff]  ;;  %v150_v22 = vsel %vm130_vm0, %v56_v13, 0  ;;  %v57_v23 = vpack.c.bf16 %v45_v19, %v44_v18  ;;  %92 = vperm.xlu0 %503, %v66_v20   ;;  %v68_v24 = vld [vmem:[%s724_s2 + $0x30] sm:$0xff]  ;;  %vm282_vm1 = vcmask 523264  }
  0x12   :  { %97 = vperm.xlu1 %504, %v67_v21   ;;  %v69_v25 = vld [vmem:[%s724_s2 + $0x38] sm:$0xff]  ;;  %v46_v26 = vld [vmem:[%s722_s0 + $0x40] sm:$0xff]  ;;  %v47_v27 = vld [vmem:[%s722_s0 + $0x48] sm:$0xff]  ;;  %vm537_vm2 = vmmov 0   ;;  %s538_s19 = smov [#allocation3]  }
  0x13   :  { %v248_v28 = vld [vmem:[%s726_s4] sm:$0xff]  ;;  %v249_v29 = vld [vmem:[%s726_s4 + $0x8] sm:$0xff]  ;;  %v153_v30 = vsel %vm130_vm0, %v57_v23, 0  ;;  %v58_v31 = vpack.c.bf16 %v47_v27, %v46_v26  ;;  %v250_v32 = vld [vmem:[%s726_s4 + $0x10] sm:$0xff]  ;;  %s405_s2 = sshll.u32 %s538_s19, 4  ;;  %s406_s2 = int_to_ptr.vmem [resolvable:$true] %s405_s2 }
  0x14   :  { %v251_v33 = vld [vmem:[%s726_s4 + $0x18] sm:$0xff]  ;;  %v48_v34 = vld [vmem:[%s722_s0 + $0x50] sm:$0xff]  ;;  %v345_v36 = vld [vmem:[#allocation2] sm:$0x1]  ;;  %s511_s20 = scalar_lea.vmem %s406_s2, 16  ;;  %s515_s21 = scalar_lea.vmem %s406_s2, 32 }
  0x15   :  { %102 = vperm.xlu0 %503, %v68_v24   ;;  %v49_v35 = vld [vmem:[%s722_s0 + $0x58] sm:$0xff]  ;;  %v156_v37 = vsel %vm130_vm0, %v58_v31, 0  ;;  %v50_v39 = vld [vmem:[%s722_s0 + $0x60] sm:$0xff]  ;;  %v51_v40 = vld [vmem:[%s722_s0 + $0x68] sm:$0xff]  ;;  %p512_p0 = scmp.ne.s32.totalorder %s406_s2, %s511_s20  ;;  %p516_p1 = scmp.lt.s32.totalorder %s406_s2, %s406_s2 }
  0x16   :  { %107 = vperm.xlu1 %504, %v69_v25   ;;  %v59_v38 = vpack.c.bf16 %v49_v35, %v48_v34  ;;  %v60_v42 = vpack.c.bf16 %v51_v40, %v50_v39  ;;  %v52_v43 = vld [vmem:[%s722_s0 + $0x70] sm:$0xff]  ;;  %v53_v44 = vld [vmem:[%s722_s0 + $0x78] sm:$0xff]  ;;  %v506_v48 = vld [vmem:[%s723_s1 + $0x8] sm:$0xff]   ;;  %v536_v25 = vmov 0.0   ;;  %p517_p2 = scmp.lt.s32.totalorder %s515_s21, %s511_s20 }
  0x17   :  { %452 = vmatpush3.bf16.xpose.msra.mxu0 %v150_v22  ;;  %v61_v46 = vpack.c.bf16 %v53_v44, %v52_v43  ;;  %v507_v49 = vld [vmem:[%s723_s1 + $0x10] sm:$0xff]   ;;  %v508_v50 = vld [vmem:[%s723_s1 + $0x18] sm:$0xff]   ;;  %v509_v51 = vld [vmem:[%s725_s3] sm:$0xff]  }
  0x18   :  { %494 = vmatprep.subr.msk.bf16.mxu0 %vm130_vm0, %v57_v23  ;;  %v159_v41 = vsel %vm130_vm0, %v59_v38, 0  ;;  %v162_v45 = vsel %vm130_vm0, %v60_v42, 0  ;;  %479 = vmatprep.mubr.msk.bf16.mxu1 %vm282_vm1, %v509_v51  ;;  %v510_v24 = vld [vmem:[%s725_s3 + $0x8] sm:$0xff]   ;;  %v342_v44 = vld [vmem:[%s727_s5] sm:$0x1]  ;;  %p518_p3 = por %p517_p2, %p516_p1 }
  0x19   :  { %254 = vperm.xlu0 %503, %v248_v28   ;;  %v165_v47 = vsel %vm130_vm0, %v61_v46, 0 }
  0x1a   :  { %259 = vperm.xlu1 %504, %v249_v29   ;;  %p519_p4 = pnand %p518_p3, %p512_p0 }
  0x1d   :  { %264 = vperm.xlu0 %503, %v250_v32  }
  0x1e   :  { %269 = vperm.xlu1 %504, %v251_v33  }
  0x1f   :  { %454 = vmatpush3.bf16.xpose.msra.mxu0 %v153_v30 }
  0x20   :  { %495 = vmatprep.subr.msk.bf16.mxu0 %vm130_vm0, %v58_v31 }
  0x21   :  { %348 = vperm.xlu0 %503, %v345_v36  }
  0x27   :  { %456 = vmatpush3.bf16.xpose.msra.mxu0 %v156_v37 }
  0x28   :  { %496 = vmatprep.subr.msk.bf16.mxu0 %vm130_vm0, %v59_v38 }
  0x2f   :  { %458 = vmatpush3.bf16.xpose.msra.mxu0 %v159_v41 }
  0x30   :  { %497 = vmatprep.subr.msk.bf16.mxu0 %vm130_vm0, %v60_v42 }
  0x37   :  { %460 = vmatpush3.bf16.xpose.msra.mxu0 %v162_v45  ;;  %v351_v45 = vlaneseq }
  0x38   :  { %498 = vmatprep.subr.msk.bf16.mxu0 %vm130_vm0, %v61_v46 }
  0x39   :  { %v352_v46 = vshrl.u32 %v351_v45, 7 }
  0x3f   :  { %462 = vmatpush3.bf16.xpose.msra.mxu0 %v165_v47  ;;  %v353_v47 = vsub.s32 0, %v352_v46 }
  0x46   :  { %464 = vmatmul.mubr.msk.bf16.vlgmr.msra.gmra.mrb[0].mxu0 %vm130_vm0, %v506_v48 }
  0x47   :  { %467 = vmatprep.mubr.msk.bf16.mxu0 %vm130_vm0, %v507_v49 }
  0x4e   :  { %468 = vmatmul.mubr.msk.bf16.gmra.mrb[4].mxu0 %vm130_vm0, %v508_v50 }
  0x86   :  { %v73_v52 = vpop.permute.xlu0 %72 }
  0x87   :  { %v83_v53 = vpop.permute.xlu1 %82 }
  0x8a   :  { %v78_v54 = vpop.permute.xlu0 %77 }
  0x8b   :  { %v88_v55 = vpop.permute.xlu1 %87 }
  0x90   :  { %v93_v59 = vpop.permute.xlu0 %92 }
  0x91   :  { %v98_v0 = vpop.permute.xlu1 %97 }
  0x94   :  { %v103_v7 = vpop.permute.xlu0 %102 }
  0x95   :  { %v108_v12 = vpop.permute.xlu1 %107 }
  0x98   :  { %v255_v26 = vpop.permute.xlu0 %254 }
  0x99   :  { %v260_v27 = vpop.permute.xlu1 %259 }
  0x9c   :  { %v265_v28 = vpop.permute.xlu0 %264 }
  0x9d   :  { %v270_v32 = vpop.permute.xlu1 %269 }
  0xa0   :  { %v349_v48 = vpop.permute.xlu0 %348 }
  0xa1   :  { %v354_v49 = vrot.slane %v349_v48, %v353_v47 }
 0x119   :  { %v465_v56 = vpop.f32.mrb[0].mxu0 }
 0x11a   :  { %v210_v57 = vadd.f32 %v465_v56, %v83_v53  ;;  %v201_v58 = vpop.f32.mrb[1].mxu0 }
 0x11b   :  { %v202_v60 = vadd.f32 %v201_v58, %v73_v52  ;;  %v466_v61 = vpop.f32.mrb[2].mxu0 }
 0x11c   :  { %v213_v62 = vadd.f32 %v466_v61, %v88_v55  ;;  %v204_v63 = vpop.f32.mrb[3].mxu0  ;;  %v234_v2 = vmax.f32 %v210_v57, 0.0 }
 0x11d   :  { %v205_v1 = vadd.f32 %v204_v63, %v78_v54  ;;  %v232_v4 = vmax.f32 %v202_v60, 0.0 }
 0x11e   :  { %v235_v3 = vmax.f32 %v213_v62, 0.0 }
 0x11f   :  { %v233_v5 = vmax.f32 %v205_v1, 0.0 }
 0x120   :  { %v245_v6 = vpack.c.bf16 %v235_v3, %v234_v2 }
 0x121   :  { %v469_v8 = vpop.f32.mrb[4].mxu0  ;;  %v244_v9 = vpack.c.bf16 %v233_v5, %v232_v4 }
 0x122   :  { %v226_v10 = vadd.f32 %v469_v8, %v103_v7  ;;  %v217_v11 = vpop.f32.mrb[5].mxu0 }
 0x123   :  { %v218_v13 = vadd.f32 %v217_v11, %v93_v59  ;;  %v470_v14 = vpop.f32.mrb[6].mxu0  ;;  %471 = vmatprep.subr.bf16.mxu1 %v244_v9 }
 0x124   :  { %v229_v15 = vadd.f32 %v470_v14, %v108_v12  ;;  %v220_v16 = vpop.f32.mrb[7].mxu0  ;;  %472 = vmatpush3.bf16.msra.mxu1 %v244_v9  ;;  %v238_v18 = vmax.f32 %v226_v10, 0.0 }
 0x125   :  { %v221_v17 = vadd.f32 %v220_v16, %v98_v0  ;;  %473 = vmatprep.subr.bf16.mxu1 %v245_v6  ;;  %v236_v20 = vmax.f32 %v218_v13, 0.0 }
 0x126   :  { %v239_v19 = vmax.f32 %v229_v15, 0.0 }
 0x127   :  { %v237_v21 = vmax.f32 %v221_v17, 0.0 }
 0x128   :  { %v247_v22 = vpack.c.bf16 %v239_v19, %v238_v18  ;;  %474 = vmatpush3.bf16.msra.mxu1 %v245_v6 }
 0x129   :  { %v246_v23 = vpack.c.bf16 %v237_v21, %v236_v20 }
 0x12b   :  { %475 = vmatprep.subr.bf16.mxu1 %v246_v23 }
 0x12c   :  { %476 = vmatpush3.bf16.msra.mxu1 %v246_v23 }
 0x12d   :  { %477 = vmatprep.subr.bf16.mxu1 %v247_v22 }
 0x130   :  { %478 = vmatpush3.bf16.msra.mxu1 %v247_v22 }
 0x131   :  { %483 = vmatprep.subr.bf16.mxu1 %v536_v25 }
 0x133   :  { %480 = vmatmul.mubr.msk.bf16.vlgmr.msra.gmra.mrb[0].mxu1 %vm282_vm1, %v510_v24 }
 0x134   :  { %487 = vmatprep.mubr.msk.bf16.mxu1 %vm537_vm2, %v536_v25 }
 0x206   :  { %v481_v29 = vpop.f32.mrb[0].mxu1 }
 0x207   :  { %v332_v30 = vadd.f32 %v481_v29, %v265_v28  ;;  %v323_v31 = vpop.f32.mrb[1].mxu1 }
 0x208   :  { %v324_v33 = vadd.f32 %v323_v31, %v255_v26  ;;  %v482_v34 = vpop.f32.mrb[2].mxu1 }
 0x209   :  { %v335_v35 = vadd.f32 %v482_v34, %v270_v32  ;;  %v326_v36 = vpop.f32.mrb[3].mxu1  ;;  %v340_v38 = vmax.f32 %v332_v30, 0.0 }
 0x20a   :  { %v327_v37 = vadd.f32 %v326_v36, %v260_v27  ;;  %v338_v40 = vmax.f32 %v324_v33, 0.0 }
 0x20b   :  { %v341_v39 = vmax.f32 %v335_v35, 0.0 }
 0x20c   :  { %v339_v41 = vmax.f32 %v327_v37, 0.0 }
 0x20d   :  { %v344_v42 = vpack.c.bf16 %v341_v39, %v340_v38 }
 0x20e   :  { %v343_v43 = vpack.c.bf16 %v339_v41, %v338_v40 }
 0x210   :  { %484 = vmatpush3.bf16.msra.mxu1 %v343_v43 }
 0x211   :  { %485 = vmatprep.subr.bf16.mxu1 %v536_v25 }
 0x214   :  { %486 = vmatpush3.bf16.msra.mxu1 %v344_v42 }
 0x217   :  { %488 = vmatmul.mubr.msk.bf16.vlgmr.msra.gmra.mrb[4].mxu1 %vm130_vm0, %v342_v44 }
 0x2ea   :  { %v392_v50 = vpop.f32.mrb[4].mxu1 }
 0x2eb   :  { %v393_v51 = vadd.f32 %v392_v50, %v354_v49  ;;  %v489_v52 = vpop.f32.mrb[5].mxu1 }
 0x2ec   :  { %v395_v53 = vpop.f32.mrb[6].mxu1 }
 0x2ed   :  { %398 = vst [vmem:[#allocation3] sm:$0x1] %v393_v51  ;;  %v490_v54 = vpop.f32.mrb[7].mxu1 }
 0x2ee   :  { %522 = shalt.err (!%p519_p4)
}
 0x2ef   :  { %s523_s23 = scalar_lea.hbm %s729_s7, 16 }
 0x2f0   :  { %p524_p5 = scmp.ne.s32.totalorder %s729_s7, %s523_s23  ;;  %p527_p6 = scmp.lt.u32.totalorder %s523_s23, %s729_s7 }
 0x2f2   :  { %p529_p7 = pnand %p527_p6, %p524_p5 }
 0x2f4   :  { %532 = shalt.err (!%p529_p7)
}
 0x2f5   :  { %408 = dma.vmem_to_hbm [thread:$0]  %s406_s2, 16, %s729_s7, [#allocation4]  }
 0x2f6   :  { %533 = dma.done.wait [#allocation4], 16  }
 0x2f7   :  { %534 = vsyncadd [#allocation4], 4294967280 }
 0x2f8   :  { %412 = vsyncpa [#allocation4], 1 }

</bundles_post_ra>
